<compile_context>
chip_gen: v7x
topology: tpu7x:2x2x1
jax: 0.10.0
libtpu: 0.0.40
codegen_flags: <defaults>
</compile_context>

<pallas_src>
import jax
import jax.numpy as jnp
from jax.experimental import pallas as pl
from jax.experimental.pallas import tpu as pltpu

EPSILON = 1e-07


def _dice_loss_kernel(x_ref, t_ref, inter_ref, union_ref):
    # x_ref, t_ref: (TB, TF) input tiles; inter_ref, union_ref: (TB, 128) f32
    # output blocks, resident in VMEM across the feature (k) axis -> they are
    # the accumulators (P3 pattern).
    k = pl.program_id(1)

    @pl.when(k == 0)
    def _init():
        inter_ref[...] = jnp.zeros_like(inter_ref)
        union_ref[...] = jnp.zeros_like(union_ref)

    tf = x_ref.shape[1]
    n_folds = tf // 128

    # Fold TF lanes down to one lane-wide (TB, 128) partial using only VPU
    # adds.  Slice the *refs* per 128-lane column (free) instead of
    # materializing the full (TB, TF) f32 tile -> no vreg spills.
    x0 = x_ref[:, 0:128].astype(jnp.float32)
    t0 = t_ref[:, 0:128].astype(jnp.float32)
    ip = x0 * t0            # -> intersection partial
    up = x0 + t0            # -> union partial
    for j in range(1, n_folds):
        lo = j * 128
        xj = x_ref[:, lo:lo + 128].astype(jnp.float32)
        tj = t_ref[:, lo:lo + 128].astype(jnp.float32)
        ip = ip + xj * tj
        up = up + (xj + tj)

    inter_ref[...] += ip
    union_ref[...] += up


def _dice_loss_impl(input_data: jax.Array, target_data: jax.Array) -> jax.Array:
    """Pallas implementation of DiceLoss.forward(). Returns shape (1,) float32."""
    assert input_data.shape == target_data.shape, (
        "Input and target data have different sizes: {} and {}".format(
            input_data.shape, target_data.shape
        )
    )
    b = input_data.shape[0]
    f = 1
    for d in input_data.shape[1:]:
        f *= d

    x2d = input_data.reshape(b, f)
    t2d = target_data.reshape(b, f)

    # ---- feature/lane alignment ------------------------------------------
    f128 = ((f + 127) // 128) * 128
    if f128 != f:
        # TODO(synk): rare ragged-F case pays one pad copy; could be handled
        # with an in-kernel lane mask instead.  Zero padding is exact for dice.
        x2d = jnp.pad(x2d, ((0, 0), (0, f128 - f)))
        t2d = jnp.pad(t2d, ((0, 0), (0, f128 - f)))
    n_lane_cols = f128 // 128          # number of 128-lane columns

    # ---- row split (sublane fill + >=2 parallel row tiles for small B) ----
    # Fold part of the feature axis into rows: (B, F) -> (B*R, F/R).  This is
    # a free reshape (contiguous), fills all 8 sublanes per vreg, and lets the
    # "parallel" row axis shard across v7x's two TensorCores even for B=2.
    r = 1
    r_cap = min(n_lane_cols, max(1, 256 // b))
    if r_cap > 1:
        for cand in range(r_cap, 0, -1):
            if n_lane_cols % cand == 0:
                r = cand
                break
    rows = b * r
    f_row = f128 // r
    n_lanes = n_lane_cols // r
    x2d = x2d.reshape(rows, f_row)
    t2d = t2d.reshape(rows, f_row)

    # ---- row tile ----------------------------------------------------------
    if rows < 16 or rows % 8 != 0:
        tb = rows                      # full-dim block (always legal), 1 tile
    else:
        tb = 8
        for cand in (64, 56, 48, 40, 32, 24, 16, 8):
            if rows % cand == 0 and rows // cand >= 2:
                tb = cand
                break

    # ---- feature tile from a VMEM byte budget ------------------------------
    # Target ~2-4 MiB per input tile (2 inputs x 2 pipeline buffers stays well
    # under the scoped VMEM limit on every generation, incl. v7x).  Cap the
    # unrolled fold count at 64 so the kernel body stays small and spill-free.
    itemsize = max(jnp.dtype(input_data.dtype).itemsize,
                   jnp.dtype(target_data.dtype).itemsize)
    budget_bytes = 4 * 1024 * 1024
    max_folds = int(max(1, min(64, budget_bytes // (tb * 128 * itemsize))))
    folds = 1
    for cand in range(min(max_folds, n_lanes), 0, -1):
        if n_lanes % cand == 0:        # divisor -> no feature padding needed
            folds = cand
            break
    tf = folds * 128

    grid = (rows // tb, n_lanes // folds)

    x_isz = jnp.dtype(input_data.dtype).itemsize
    t_isz = jnp.dtype(target_data.dtype).itemsize
    cost = pl.CostEstimate(
        flops=3 * b * f,                               # mul + 2 adds per element
        transcendentals=0,
        bytes_accessed=b * f * (x_isz + t_isz) + 2 * rows * 128 * 4,
    )

    inter_out, union_out = pl.pallas_call(
        _dice_loss_kernel,
        out_shape=(jax.ShapeDtypeStruct((rows, 128), jnp.float32),
                   jax.ShapeDtypeStruct((rows, 128), jnp.float32)),
        grid_spec=pltpu.PrefetchScalarGridSpec(
            num_scalar_prefetch=0,
            grid=grid,
            in_specs=[
                pl.BlockSpec((tb, tf), lambda i, k: (i, k)),
                pl.BlockSpec((tb, tf), lambda i, k: (i, k)),
            ],
            out_specs=[
                pl.BlockSpec((tb, 128), lambda i, k: (i, 0)),
                pl.BlockSpec((tb, 128), lambda i, k: (i, 0)),
            ],
        ),
        compiler_params=pltpu.CompilerParams(
            dimension_semantics=("parallel", "arbitrary"),
            vmem_limit_bytes=32 * 1024 * 1024,
        ),
        cost_estimate=cost,
    )(x2d, t2d)

    # Tiny epilogue in XLA: cross-lane + cross-row-group reduce, dice formula,
    # mean over the real batch.
    inter = jnp.sum(inter_out, axis=-1).reshape(b, r).sum(axis=-1)   # (B,)
    union = jnp.sum(union_out, axis=-1).reshape(b, r).sum(axis=-1)   # (B,)
    dice = 1.0 - (2.0 * inter + EPSILON) / (union + EPSILON)
    loss = jnp.sum(dice) / jnp.float32(b)
    # PyTorch returns a FloatTensor of shape (1,).
    return loss.reshape(1).astype(jnp.float32)


dice_loss = jax.jit(_dice_loss_impl)


def _reference(input_data, target_data):
    b = input_data.shape[0]
    x = input_data.reshape(b, -1).astype(jnp.float32)
    t = target_data.reshape(b, -1).astype(jnp.float32)
    inter = jnp.sum(x * t, axis=-1)
    union = jnp.sum(x, axis=-1) + jnp.sum(t, axis=-1)
    dice = 1.0 - (2.0 * inter + EPSILON) / (union + EPSILON)
    return (jnp.sum(dice) / b).reshape(1)


if __name__ == "__main__":
    key = jax.random.PRNGKey(0)
    k1, k2 = jax.random.split(key)

    # Small NCHW shapes consistent with a segmentation-style dice loss.
    B, C, H, W = 2, 4, 16, 16
    input_data = jax.random.uniform(k1, (B, C, H, W), dtype=jnp.float32)
    target_data = (jax.random.uniform(k2, (B, C, H, W)) > 0.5).astype(jnp.float32)

    loss = dice_loss(input_data, target_data)
    jax.block_until_ready(loss)

    ref = _reference(input_data, target_data)
    assert loss.shape == (1,), loss.shape
    assert jnp.allclose(loss, ref, rtol=1e-5, atol=1e-6), (loss, ref)

    print("KERNEL_OK")
</pallas_src>

<mosaic_0001>
module attributes {stable_mosaic.version = 11 : i64} {
  func.func @_dice_loss_kernel(%arg0: i32, %arg1: i32, %arg2: memref<8x128xf32, #tpu.memory_space<vmem>>, %arg3: memref<8x128xf32, #tpu.memory_space<vmem>>, %arg4: memref<8x128xf32, #tpu.memory_space<vmem>>, %arg5: memref<8x128xf32, #tpu.memory_space<vmem>>) attributes {dimension_semantics = [#tpu.dimension_semantics<parallel>, #tpu.dimension_semantics<arbitrary>], iteration_bounds = array<i64: 2, 1>, scalar_prefetch = 0 : i64, scratch_operands = 0 : i64, tpu.core_type = #tpu.core_type<tc>, window_params = [{transform_indices = @transform_0, window_bounds = array<i64: 8, 128>}, {transform_indices = @transform_1, window_bounds = array<i64: 8, 128>}, {transform_indices = @transform_2, window_bounds = array<i64: 8, 128>}, {transform_indices = @transform_3, window_bounds = array<i64: 8, 128>}]} {
    %c0_i32 = arith.constant 0 : i32
    %0 = arith.cmpi eq, %arg1, %c0_i32 : i32
    %1 = arith.extui %0 : i1 to i32
    %c0_i32_0 = arith.constant 0 : i32
    %2 = arith.cmpi ne, %1, %c0_i32_0 : i32
    scf.if %2 {
      %cst = arith.constant 0.000000e+00 : f32
      %13 = vector.broadcast %cst : f32 to vector<8x128xf32>
      %c0_12 = arith.constant 0 : index
      %c0_13 = arith.constant 0 : index
      %14 = vector.load %arg4[%c0_12, %c0_13] : memref<8x128xf32, #tpu.memory_space<vmem>>, vector<8x128xf32>
      tpu.vector_store %arg4[%c0_12, %c0_13], %13 {strides = array<i32>} : memref<8x128xf32, #tpu.memory_space<vmem>>, vector<8x128xf32>,
      %cst_14 = arith.constant 0.000000e+00 : f32
      %15 = vector.broadcast %cst_14 : f32 to vector<8x128xf32>
      %c0_15 = arith.constant 0 : index
      %c0_16 = arith.constant 0 : index
      %16 = vector.load %arg5[%c0_15, %c0_16] : memref<8x128xf32, #tpu.memory_space<vmem>>, vector<8x128xf32>
      tpu.vector_store %arg5[%c0_15, %c0_16], %15 {strides = array<i32>} : memref<8x128xf32, #tpu.memory_space<vmem>>, vector<8x128xf32>,
    } else {
    }
    %c0 = arith.constant 0 : index
    %c0_1 = arith.constant 0 : index
    %3 = vector.load %arg2[%c0, %c0_1] : memref<8x128xf32, #tpu.memory_space<vmem>>, vector<8x128xf32>
    %c0_2 = arith.constant 0 : index
    %c0_3 = arith.constant 0 : index
    %4 = vector.load %arg3[%c0_2, %c0_3] : memref<8x128xf32, #tpu.memory_space<vmem>>, vector<8x128xf32>
    %5 = arith.mulf %3, %4 : vector<8x128xf32>
    %6 = arith.addf %3, %4 : vector<8x128xf32>
    %c0_4 = arith.constant 0 : index
    %c0_5 = arith.constant 0 : index
    %7 = vector.load %arg4[%c0_4, %c0_5] : memref<8x128xf32, #tpu.memory_space<vmem>>, vector<8x128xf32>
    %8 = arith.addf %7, %5 : vector<8x128xf32>
    %c0_6 = arith.constant 0 : index
    %c0_7 = arith.constant 0 : index
    %9 = vector.load %arg4[%c0_6, %c0_7] : memref<8x128xf32, #tpu.memory_space<vmem>>, vector<8x128xf32>
    tpu.vector_store %arg4[%c0_6, %c0_7], %8 {strides = array<i32>} : memref<8x128xf32, #tpu.memory_space<vmem>>, vector<8x128xf32>,
    %c0_8 = arith.constant 0 : index
    %c0_9 = arith.constant 0 : index
    %10 = vector.load %arg5[%c0_8, %c0_9] : memref<8x128xf32, #tpu.memory_space<vmem>>, vector<8x128xf32>
    %11 = arith.addf %10, %6 : vector<8x128xf32>
    %c0_10 = arith.constant 0 : index
    %c0_11 = arith.constant 0 : index
    %12 = vector.load %arg5[%c0_10, %c0_11] : memref<8x128xf32, #tpu.memory_space<vmem>>, vector<8x128xf32>
    tpu.vector_store %arg5[%c0_10, %c0_11], %11 {strides = array<i32>} : memref<8x128xf32, #tpu.memory_space<vmem>>, vector<8x128xf32>,
    return
  }
  func.func @transform_0(%arg0: i32, %arg1: i32) -> (i32, i32) {
    %c0_i32 = arith.constant 0 : i32
    return %arg0, %arg1 : i32, i32
  }
  func.func @transform_1(%arg0: i32, %arg1: i32) -> (i32, i32) {
    %c0_i32 = arith.constant 0 : i32
    return %arg0, %arg1 : i32, i32
  }
  func.func @transform_2(%arg0: i32, %arg1: i32) -> (i32, i32) {
    %c0_i32 = arith.constant 0 : i32
    %c0_i32_0 = arith.constant 0 : i32
    return %arg0, %c0_i32 : i32, i32
  }
  func.func @transform_3(%arg0: i32, %arg1: i32) -> (i32, i32) {
    %c0_i32 = arith.constant 0 : i32
    %c0_i32_0 = arith.constant 0 : i32
    return %arg0, %c0_i32 : i32, i32
  }
}

</mosaic_0001>

<bundles_post_ra>
// kernel: _dice_loss_impl.1
= control target key start
LH: loop header
LB: loop body
LE: loop exit
PB: predicated region body
PF: predicated region fallthrough
CT: control target
= control target key end

     0   :  { %s434_s12 = smov 0   ;;  %s436_s13 = smov 0   ;;  %s461_s0 = inlined_call_operand.vmem [shape: f32[16,128], index: 0, kind: input, shape index: {}]   ;;  %s462_s1 = inlined_call_operand.vmem [shape: f32[16,128], index: 1, kind: input, shape index: {}]   ;;  %s463_s2 = inlined_call_operand.vmem [shape: f32[16,128], index: 2, kind: output, shape index: {0}]   ;;  %s464_s3 = inlined_call_operand.vmem [shape: f32[16,128], index: 3, kind: output, shape index: {1}]  }
   0x1   :  { %s438_s14 = smov 0  }
   0x2 LB: > { %s26_s15 = sadd.s32 1, %s408_s13  ;;  %p358_p0 = scmp.ge.s32.totalorder %s412_s14, 1  ;;  %s412_s14 = sphi %s438_s14, %s14_s14   ;;  %s408_s13 = sphi %s436_s13, %s466_s13   ;;  %s404_s12 = sphi %s434_s12, %s465_s12  }
   0x3   : > { %p28_p1 = scmp.ge.s32.totalorder %s26_s15, 2  ;;  %p170_p2 = scmp.lt.s32.totalorder %s412_s14, 3 }
   0x5   : > { %s468_s15 = smov (%p28_p1, %s26_s15), 0  ;;  %p171_p3 = pnand %p358_p0, %p170_p2 }
   0x6   : > { %p206_p4 = scmp.lt.s32.totalorder (!%p171_p3), %s404_s12, 1 }
   0x7   : > { %174 = sbr.rel (%p171_p3) target bundleno = 22 (0x16), region = 28 }
   0xe   : > { %s470_s12 = smov (!%p206_p4, %s404_s12), 1 }
   0xf   : > { %s359_s16 = sshll.u32 %s470_s12, 3 }
  0x10   : > { %s212_s19 = scalar_lea.vmem %s461_s0, %s359_s16  ;;  %s219_s22 = scalar_lea.vmem %s462_s1, %s359_s16 }
  0x11   : > { %v234_v0 = vld [vmem:[%s212_s19] sm:$0xff]  ;;  %s223_s25 = scalar_lea.vmem %s463_s2, %s359_s16  ;;  %s227_s28 = scalar_lea.vmem %s464_s3, %s359_s16 }
  0x12   : > { %v235_v1 = vld [vmem:[%s219_s22] sm:$0xff] }
  0x13   : > { %v236_v2 = vmul.f32 %v235_v1, %v234_v0  ;;  %v237_v3 = vadd.f32 %v235_v1, %v234_v0 }
  0x15   : > { %240 = vst [vmem:[%s223_s25] sm:$0xff] %v236_v2  ;;  %243 = vst [vmem:[%s227_s28] sm:$0xff] %v237_v3 }
  0x16 PF: > { %s14_s14 = sadd.s32 1, %s412_s14   ;;  %s465_s12 = smov %s408_s13 }
  0x17   : > { %p11_p5 = scmp.ge.s32.totalorder %s14_s14, 4   ;;  %s466_s13 = smov %s468_s15 }
  0x19   :  { %13 = sbr.rel (!%p11_p5) target bundleno = 2 (0x2), region = 77 }

</bundles_post_ra>
